<compile_context>
chip_gen: v5e
topology: v5e:2x2
jax: 0.10.0
libtpu: 0.0.40
codegen_flags: <defaults>
</compile_context>

<pallas_src>
import functools

import jax
import jax.numpy as jnp
from jax.experimental import pallas as pl
from jax.experimental.pallas import tpu as pltpu


def _round_up(x, m):
    return (x + m - 1) // m * m


def _pad_cast_2d(a, rows, cols, dtype):
    r, c = a.shape
    if (r, c) != (rows, cols):
        a = jnp.pad(a, ((0, rows - r), (0, cols - c)))
    if a.dtype != dtype:
        a = a.astype(dtype)
    return a


def _tpu_vmem_and_chip():
    """Best-effort trace-time hardware query with conservative fallbacks."""
    vmem_cap = 64 << 20
    chip = ""
    try:
        info = pltpu.get_tpu_info()
        vmem_cap = int(getattr(info, "vmem_capacity_bytes", vmem_cap))
        chip = str(getattr(info, "chip_version", "") or
                   getattr(info, "name", "")).lower()
    except Exception:
        pass
    if "v7" in chip:
        vmem_cap = min(vmem_cap, 64 << 20)      # per-TC budget on v7x
    vmem_cap = max(32 << 20, min(vmem_cap, 128 << 20))
    return vmem_cap, chip


# ---------------------------------------------------------------------------
# Kernels
# ---------------------------------------------------------------------------
def _ffn_resident_kernel(x_ref, w1_ref, b1_ref, w2_ref, b2_ref, o_ref):
    """Weights fully VMEM-resident (constant index maps -> DMA'd once total)."""
    h = jnp.dot(x_ref[...], w1_ref[...], preferred_element_type=jnp.float32)
    h = jnp.maximum(h + b1_ref[...].astype(jnp.float32), 0.0)   # bias1 + ReLU
    out = jnp.dot(h.astype(w2_ref.dtype), w2_ref[...],
                  preferred_element_type=jnp.float32)
    # TODO(synk): training-mode dropout (stochastic masking) not applied;
    # inference semantics (nn.Dropout in eval) == identity.
    o_ref[...] = (out + b2_ref[...].astype(jnp.float32)).astype(o_ref.dtype)


def _ffn_streamed_kernel(x_ref, w1_ref, b1_ref, w2_ref, b2_ref, o_ref, *scratch,
                         bf):
    """d_ff streamed in slabs along grid axis j; partials accumulated in f32.

    If `scratch` is empty the output dtype is f32 and o_ref doubles as the
    accumulator (it is VMEM-resident across j: its block index ignores j).
    """
    acc_ref = scratch[0] if scratch else o_ref
    j = pl.program_id(1)

    h = jnp.dot(x_ref[...], w1_ref[...], preferred_element_type=jnp.float32)
    off = pl.multiple_of(j * bf, 128)
    b1 = b1_ref[:, pl.ds(off, bf)].astype(jnp.float32)
    h = jnp.maximum(h + b1, 0.0)                 # bias1 + ReLU, exact per slab

    partial = jnp.dot(h.astype(w2_ref.dtype), w2_ref[...],
                      preferred_element_type=jnp.float32)

    @pl.when(j == 0)
    def _():
        # Fold b2 into the first partial: no zeros-init store, no epilogue add.
        acc_ref[...] = partial + b2_ref[...].astype(jnp.float32)

    @pl.when(j > 0)
    def _():
        acc_ref[...] += partial

    if scratch:
        @pl.when(j == pl.num_programs(1) - 1)
        def _():
            o_ref[...] = acc_ref[...].astype(o_ref.dtype)


# ---------------------------------------------------------------------------
# Wrapper
# ---------------------------------------------------------------------------
@functools.partial(jax.jit, static_argnames=("block_m", "block_ff",
                                             "compute_dtype", "_force_path"))
def positionwise_feed_forward(x, w1, b1, w2, b2, *,
                              block_m=None, block_ff=512,
                              compute_dtype=jnp.bfloat16, _force_path=None):
    """x: [batch, seq, d_model]; w1: [d_model, d_ff]; b1: [d_ff];
    w2: [d_ff, d_model]; b2: [d_model].  Returns [batch, seq, d_model] in x.dtype.

    MXU operands are cast to `compute_dtype` (bf16 by default: the native MXU
    fast path); accumulation is always f32.
    """
    batch, seq, d_model = x.shape
    d_ff = w1.shape[1]
    out_dtype = x.dtype
    compute_dtype = jnp.dtype(compute_dtype)
    c_sz = compute_dtype.itemsize
    o_sz = jnp.dtype(out_dtype).itemsize

    tokens = batch * seq
    d_model_p = _round_up(d_model, 128)           # lane-dense features
    d_ff_p = _round_up(d_ff, 128)

    vmem_cap, chip = _tpu_vmem_and_chip()
    vmem_budget = max(32 << 20, vmem_cap - (16 << 20))   # headroom for compiler
    margin = 2 << 20                                     # internal scratch etc.

    # Per-generation default token tile (weight-stream intensity ~ bm flops/byte).
    if block_m is None:
        if vmem_cap <= (80 << 20):     # v7x: 64 MiB/TC -> ~512 rows is compute-bound
            block_m = 512
        elif "v5" in chip:             # v5e: single vst slot; keep tiles modest
            block_m = 512
        else:                          # v6e / other 128 MiB parts
            block_m = 1024

    bm = min(_round_up(block_m, 8), _round_up(tokens, 8))
    # v7x megacore: make sure there are >= 2 token tiles so neither TC idles.
    if tokens > 8 and _round_up(tokens, bm) // bm < 2:
        bm = max(8, _round_up((tokens + 1) // 2, 8))

    # d_ff slab: largest multiple of 128 <= block_ff that divides d_ff_p exactly.
    bf = min(_round_up(block_ff, 128), d_ff_p)
    while d_ff_p % bf:
        bf -= 128

    use_scratch = jnp.dtype(out_dtype) != jnp.float32   # f32 out -> acc in o_ref

    def resident_need(bm_):
        return (2 * bm_ * d_model_p * c_sz            # x tiles (double-buffered)
                + 2 * bm_ * d_model_p * o_sz          # out tiles
                + 2 * d_model_p * d_ff_p * c_sz       # W1 (counted x2 for safety)
                + 2 * d_ff_p * d_model_p * c_sz       # W2
                + 2 * (d_ff_p + d_model_p) * 4        # biases (f32)
                + bm_ * d_ff_p * (4 + c_sz)           # hidden h f32 + cast copy
                + margin)

    def streamed_need(bm_, bf_):
        need = (2 * bm_ * d_model_p * c_sz            # x tiles
                + 2 * bm_ * d_model_p * o_sz          # out tiles
                + 2 * d_model_p * bf_ * c_sz          # W1 slabs
                + 2 * bf_ * d_model_p * c_sz          # W2 slabs
                + 2 * (d_ff_p + d_model_p) * 4        # biases
                + bm_ * bf_ * (4 + c_sz)              # hidden h f32 + cast copy
                + margin)
        if use_scratch:
            need += bm_ * d_model_p * 4               # f32 accumulator scratch
        return need

    if _force_path == "resident":
        use_resident = True
    elif _force_path == "streamed":
        use_resident = False
    else:
        use_resident = resident_need(bm) <= vmem_budget

    if not use_resident:
        # Auto-shrink tiles if over budget (large d_model / f32 compute on v7x).
        while streamed_need(bm, bf) > vmem_budget and bm > 8:
            bm = max(8, _round_up(bm // 2, 8))
        while streamed_need(bm, bf) > vmem_budget and bf > 128:
            bf = max(128, bf - 128)
            while d_ff_p % bf:
                bf -= 128

    tokens_p = _round_up(tokens, bm)
    n_tiles_i = tokens_p // bm

    # Zero padding is numerically inert: padded d_ff columns contribute
    # ReLU(0)=0, padded d_model columns and padded rows are sliced off below.
    # Casting to compute_dtype happens once here, not per grid step in-kernel.
    # TODO(synk): for production, pad/cast the static weights once at parameter
    # init time instead of on every call under jit.
    x_p = _pad_cast_2d(x.reshape(tokens, d_model), tokens_p, d_model_p,
                       compute_dtype)
    w1_p = _pad_cast_2d(w1, d_model_p, d_ff_p, compute_dtype)
    w2_p = _pad_cast_2d(w2, d_ff_p, d_model_p, compute_dtype)
    b1_p = _pad_cast_2d(b1.reshape(1, d_ff), 1, d_ff_p, jnp.float32)
    b2_p = _pad_cast_2d(b2.reshape(1, d_model), 1, d_model_p, jnp.float32)

    need = resident_need(bm) if use_resident else streamed_need(bm, bf)
    vmem_limit = int(max(32 << 20, min(vmem_budget, need + (4 << 20))))

    flops = 4 * tokens * d_model * d_ff                 # 2 matmuls x 2 flop/MAC
    weight_passes = 1 if use_resident else n_tiles_i    # W1/W2 per token tile
    bytes_accessed = int(tokens_p * d_model_p * (c_sz + o_sz)
                         + weight_passes * 2 * d_model_p * d_ff_p * c_sz
                         + (d_ff_p + d_model_p) * 4)
    cost = pl.CostEstimate(flops=int(flops), transcendentals=0,
                           bytes_accessed=bytes_accessed)

    out_shape = jax.ShapeDtypeStruct((tokens_p, d_model_p), out_dtype)

    if use_resident:
        out2d = pl.pallas_call(
            _ffn_resident_kernel,
            out_shape=out_shape,
            grid_spec=pltpu.PrefetchScalarGridSpec(
                num_scalar_prefetch=0,
                grid=(n_tiles_i,),
                in_specs=[
                    pl.BlockSpec((bm, d_model_p), lambda i: (i, 0)),       # x tile
                    pl.BlockSpec((d_model_p, d_ff_p), lambda i: (0, 0)),   # W1 (once)
                    pl.BlockSpec((1, d_ff_p), lambda i: (0, 0)),           # b1 (once)
                    pl.BlockSpec((d_ff_p, d_model_p), lambda i: (0, 0)),   # W2 (once)
                    pl.BlockSpec((1, d_model_p), lambda i: (0, 0)),        # b2 (once)
                ],
                out_specs=pl.BlockSpec((bm, d_model_p), lambda i: (i, 0)),
            ),
            compiler_params=pltpu.CompilerParams(
                dimension_semantics=("parallel",),
                vmem_limit_bytes=vmem_limit),
            cost_estimate=cost,
        )(x_p, w1_p, b1_p, w2_p, b2_p)
    else:
        scratch_shapes = ([pltpu.VMEM((bm, d_model_p), jnp.float32)]
                          if use_scratch else [])
        out2d = pl.pallas_call(
            functools.partial(_ffn_streamed_kernel, bf=bf),
            out_shape=out_shape,
            grid_spec=pltpu.PrefetchScalarGridSpec(
                num_scalar_prefetch=0,
                grid=(n_tiles_i, d_ff_p // bf),
                in_specs=[
                    pl.BlockSpec((bm, d_model_p), lambda i, j: (i, 0)),    # x tile
                    pl.BlockSpec((d_model_p, bf), lambda i, j: (0, j)),    # W1 slab
                    pl.BlockSpec((1, d_ff_p), lambda i, j: (0, 0)),        # b1 (full, once)
                    pl.BlockSpec((bf, d_model_p), lambda i, j: (j, 0)),    # W2 slab
                    pl.BlockSpec((1, d_model_p), lambda i, j: (0, 0)),     # b2 (once)
                ],
                out_specs=pl.BlockSpec((bm, d_model_p), lambda i, j: (i, 0)),
                scratch_shapes=scratch_shapes,
            ),
            compiler_params=pltpu.CompilerParams(
                dimension_semantics=("parallel", "arbitrary"),
                vmem_limit_bytes=vmem_limit),
            cost_estimate=cost,
        )(x_p, w1_p, b1_p, w2_p, b2_p)

    if tokens_p != tokens or d_model_p != d_model:
        out2d = out2d[:tokens, :d_model]
    return out2d.reshape(batch, seq, d_model)


def _init_params(key, d_model, d_ff, dtype=jnp.float32):
    """Deterministic init mimicking torch.nn.Linear (uniform +/- 1/sqrt(fan_in))."""
    k1, k2, k3, k4 = jax.random.split(key, 4)
    bound1 = 1.0 / (d_model ** 0.5)
    bound2 = 1.0 / (d_ff ** 0.5)
    # stored already transposed relative to torch's (out, in) convention
    w1 = jax.random.uniform(k1, (d_model, d_ff), dtype, -bound1, bound1)
    b1 = jax.random.uniform(k2, (d_ff,), dtype, -bound1, bound1)
    w2 = jax.random.uniform(k3, (d_ff, d_model), dtype, -bound2, bound2)
    b2 = jax.random.uniform(k4, (d_model,), dtype, -bound2, bound2)
    return w1, b1, w2, b2


if __name__ == "__main__":
    key = jax.random.PRNGKey(0)
    kx, kp = jax.random.split(key)

    batch, seq, d_model, d_ff = 2, 8, 32, 256
    x = jax.random.normal(kx, (batch, seq, d_model), jnp.float32)
    w1, b1, w2, b2 = _init_params(kp, d_model, d_ff)

    # pure-JAX f32 reference (eval-mode dropout == identity)
    ref = (jnp.maximum(x.reshape(-1, d_model) @ w1 + b1[None, :], 0.0) @ w2
           + b2[None, :]).reshape(batch, seq, d_model)

    # 1) production default: bf16 MXU operands, f32 accumulation, auto path
    out = jax.block_until_ready(positionwise_feed_forward(x, w1, b1, w2, b2))
    assert out.shape == x.shape and out.dtype == x.dtype
    assert jnp.allclose(out, ref, atol=5e-2, rtol=5e-2), \
        float(jnp.max(jnp.abs(out - ref)))

    # 2) f32 compute, weights-resident path (tight tolerance)
    out_res = jax.block_until_ready(positionwise_feed_forward(
        x, w1, b1, w2, b2, compute_dtype=jnp.float32, _force_path="resident"))
    assert jnp.allclose(out_res, ref, atol=1e-4, rtol=1e-4), \
        float(jnp.max(jnp.abs(out_res - ref)))

    # 3) f32 compute, streamed-d_ff path (accumulates directly into the f32 out)
    out_str = jax.block_until_ready(positionwise_feed_forward(
        x, w1, b1, w2, b2, compute_dtype=jnp.float32, block_ff=128,
        _force_path="streamed"))
    assert jnp.allclose(out_str, ref, atol=1e-4, rtol=1e-4), \
        float(jnp.max(jnp.abs(out_str - ref)))

    # 4) bf16 activations + bf16 output -> exercises the f32 scratch accumulator
    out_bf = jax.block_until_ready(positionwise_feed_forward(
        x.astype(jnp.bfloat16), w1, b1, w2, b2, block_ff=128,
        _force_path="streamed"))
    assert out_bf.dtype == jnp.bfloat16 and out_bf.shape == x.shape
    assert jnp.allclose(out_bf.astype(jnp.float32), ref, atol=1e-1, rtol=1e-1)

    print("KERNEL_OK")
</pallas_src>

<mosaic_0001>
module attributes {stable_mosaic.version = 11 : i64} {
  func.func @_ffn_resident_kernel(%arg0: i32, %arg1: memref<8x128xbf16, #tpu.memory_space<vmem>>, %arg2: memref<128x256xbf16, #tpu.memory_space<vmem>>, %arg3: memref<1x256xf32, #tpu.memory_space<vmem>>, %arg4: memref<256x128xbf16, #tpu.memory_space<vmem>>, %arg5: memref<1x128xf32, #tpu.memory_space<vmem>>, %arg6: memref<8x128xf32, #tpu.memory_space<vmem>>) attributes {dimension_semantics = [#tpu.dimension_semantics<parallel>], iteration_bounds = array<i64: 2>, scalar_prefetch = 0 : i64, scratch_operands = 0 : i64, tpu.core_type = #tpu.core_type<tc>, window_params = [{transform_indices = @transform_0, window_bounds = array<i64: 8, 128>}, {pipeline_mode = #tpu.pipeline_mode<synchronous>, transform_indices = @transform_1, window_bounds = array<i64: 128, 256>}, {pipeline_mode = #tpu.pipeline_mode<synchronous>, transform_indices = @transform_2, window_bounds = array<i64: 1, 256>}, {pipeline_mode = #tpu.pipeline_mode<synchronous>, transform_indices = @transform_3, window_bounds = array<i64: 256, 128>}, {pipeline_mode = #tpu.pipeline_mode<synchronous>, transform_indices = @transform_4, window_bounds = array<i64: 1, 128>}, {transform_indices = @transform_5, window_bounds = array<i64: 8, 128>}]} {
    %c0 = arith.constant 0 : index
    %c0_0 = arith.constant 0 : index
    %0 = vector.load %arg1[%c0, %c0_0] : memref<8x128xbf16, #tpu.memory_space<vmem>>, vector<8x128xbf16>
    %c0_1 = arith.constant 0 : index
    %c0_2 = arith.constant 0 : index
    %1 = vector.load %arg2[%c0_1, %c0_2] : memref<128x256xbf16, #tpu.memory_space<vmem>>, vector<128x256xbf16>
    %cst = arith.constant dense<0.000000e+00> : vector<8x256xf32>
    %2 = tpu.matmul %0, %1, %cst {dimension_numbers = #tpu.dot_dimension_numbers<[1], [0], [0], [1], [0, 0, 1, 1], [], []>} : vector<8x128xbf16>, vector<128x256xbf16>, vector<8x256xf32> -> vector<8x256xf32>
    %c0_3 = arith.constant 0 : index
    %c0_4 = arith.constant 0 : index
    %3 = vector.load %arg3[%c0_3, %c0_4] : memref<1x256xf32, #tpu.memory_space<vmem>>, vector<1x256xf32>
    %4 = vector.broadcast %3 : vector<1x256xf32> to vector<8x256xf32>
    %5 = arith.addf %2, %4 : vector<8x256xf32>
    %cst_5 = arith.constant 0.000000e+00 : f32
    %6 = vector.broadcast %cst_5 : f32 to vector<8x256xf32>
    %7 = arith.maximumf %5, %6 : vector<8x256xf32>
    %8 = arith.truncf %7 : vector<8x256xf32> to vector<8x256xbf16>
    %c0_6 = arith.constant 0 : index
    %c0_7 = arith.constant 0 : index
    %9 = vector.load %arg4[%c0_6, %c0_7] : memref<256x128xbf16, #tpu.memory_space<vmem>>, vector<256x128xbf16>
    %cst_8 = arith.constant dense<0.000000e+00> : vector<8x128xf32>
    %10 = tpu.matmul %8, %9, %cst_8 {dimension_numbers = #tpu.dot_dimension_numbers<[1], [0], [0], [1], [0, 0, 1, 1], [], []>} : vector<8x256xbf16>, vector<256x128xbf16>, vector<8x128xf32> -> vector<8x128xf32>
    %c0_9 = arith.constant 0 : index
    %c0_10 = arith.constant 0 : index
    %11 = vector.load %arg5[%c0_9, %c0_10] : memref<1x128xf32, #tpu.memory_space<vmem>>, vector<1x128xf32>
    %12 = vector.broadcast %11 : vector<1x128xf32> to vector<8x128xf32>
    %13 = arith.addf %10, %12 : vector<8x128xf32>
    %c0_11 = arith.constant 0 : index
    %c0_12 = arith.constant 0 : index
    %14 = vector.load %arg6[%c0_11, %c0_12] : memref<8x128xf32, #tpu.memory_space<vmem>>, vector<8x128xf32>
    tpu.vector_store %arg6[%c0_11, %c0_12], %13 {strides = array<i32>} : memref<8x128xf32, #tpu.memory_space<vmem>>, vector<8x128xf32>,
    return
  }
  func.func @transform_0(%arg0: i32) -> (i32, i32) {
    %c0_i32 = arith.constant 0 : i32
    %c0_i32_0 = arith.constant 0 : i32
    return %arg0, %c0_i32 : i32, i32
  }
  func.func @transform_1(%arg0: i32) -> (i32, i32) {
    %c0_i32 = arith.constant 0 : i32
    %c0_i32_0 = arith.constant 0 : i32
    %c0_i32_1 = arith.constant 0 : i32
    return %c0_i32, %c0_i32_0 : i32, i32
  }
  func.func @transform_2(%arg0: i32) -> (i32, i32) {
    %c0_i32 = arith.constant 0 : i32
    %c0_i32_0 = arith.constant 0 : i32
    %c0_i32_1 = arith.constant 0 : i32
    return %c0_i32, %c0_i32_0 : i32, i32
  }
  func.func @transform_3(%arg0: i32) -> (i32, i32) {
    %c0_i32 = arith.constant 0 : i32
    %c0_i32_0 = arith.constant 0 : i32
    %c0_i32_1 = arith.constant 0 : i32
    return %c0_i32, %c0_i32_0 : i32, i32
  }
  func.func @transform_4(%arg0: i32) -> (i32, i32) {
    %c0_i32 = arith.constant 0 : i32
    %c0_i32_0 = arith.constant 0 : i32
    %c0_i32_1 = arith.constant 0 : i32
    return %c0_i32, %c0_i32_0 : i32, i32
  }
  func.func @transform_5(%arg0: i32) -> (i32, i32) {
    %c0_i32 = arith.constant 0 : i32
    %c0_i32_0 = arith.constant 0 : i32
    return %arg0, %c0_i32 : i32, i32
  }
}

</mosaic_0001>

<bundles_post_ra>
// kernel: positionwise_feed_forward.1
= control target key start
LH: loop header
LB: loop body
LE: loop exit
PB: predicated region body
PF: predicated region fallthrough
CT: control target
= control target key end

     0   :  { %s781_s18 = smov 0   ;;  %s956_s0 = inlined_call_operand.vmem [shape: bf16[16,128], index: 0, kind: input, shape index: {}]   ;;  %s957_s1 = inlined_call_operand.vmem [shape: bf16[128,256], index: 1, kind: input, shape index: {}]   ;;  %s958_s2 = inlined_call_operand.vmem [shape: f32[1,256], index: 2, kind: input, shape index: {}]   ;;  %s959_s3 = inlined_call_operand.vmem [shape: bf16[256,128], index: 3, kind: input, shape index: {}]   ;;  %s960_s4 = inlined_call_operand.vmem [shape: f32[1,128], index: 4, kind: input, shape index: {}]   ;;  %s961_s5 = inlined_call_operand.vmem [shape: f32[16,128], index: 5, kind: output, shape index: {}]  }
   0x1 LB: > { %s565_s19 = sadd.s32 4294967295, %s749_s18   ;;  %p569_p0 = scmp.ge.s32.totalorder %s749_s18, 1  ;;  %s749_s18 = sphi %s781_s18, %s15_s18  }
   0x2   : > { %p186_p1 = scmp.lt.s32.totalorder %s749_s18, 3 }
   0x4   : > { %p187_p2 = pnand %p569_p0, %p186_p1 }
   0x5   : > { %p212_p3 = scmp.lt.s32.totalorder (!%p187_p2), %s565_s19, 1 }
   0x6   : > { %190 = sbr.rel (%p187_p2) target bundleno = 318 (0x13e), region = 40 }
   0xb   : > { %v630_v0 = vld [vmem:[%s957_s1 + $0x70] sm:$0xf]  ;;  %v717_v1 = vld [vmem:[%s957_s1 + $0x74] sm:$0xf0]  ;;  %v716_v2 = vld [vmem:[%s957_s1 + $0x74] sm:$0xf] }
   0xc   : > { %v631_v3 = vor.u32 %v717_v1, %v630_v0  ;;  %v632_v4 = vld [vmem:[%s957_s1 + $0x78] sm:$0xf0]  ;;  %v622_v5 = vld [vmem:[%s957_s1 + $0x60] sm:$0xf]  ;;  %v715_v6 = vld [vmem:[%s957_s1 + $0x64] sm:$0xf0] }
   0xd   : > { %v635_v7 = vor.u32 %v716_v2, %v632_v4  ;;  %v714_v8 = vld [vmem:[%s957_s1 + $0x64] sm:$0xf]  ;;  %v624_v9 = vld [vmem:[%s957_s1 + $0x68] sm:$0xf0]  ;;  %v623_v10 = vor.u32 %v715_v6, %v622_v5  ;;  %v614_v12 = vld [vmem:[%s957_s1 + $0x50] sm:$0xf] }
   0xe   : > { %323 = vmatpush.bf16.msra.mxu0 %v631_v3  ;;  %v627_v11 = vor.u32 %v714_v8, %v624_v9  ;;  %v713_v13 = vld [vmem:[%s957_s1 + $0x54] sm:$0xf0]  ;;  %v712_v14 = vld [vmem:[%s957_s1 + $0x54] sm:$0xf]  ;;  %v616_v15 = vld [vmem:[%s957_s1 + $0x58] sm:$0xf0] }
   0xf   : > { %336 = vmatpush.bf16.msra.mxu1 %v635_v7  ;;  %v615_v16 = vor.u32 %v713_v13, %v614_v12  ;;  %v619_v17 = vor.u32 %v712_v14, %v616_v15  ;;  %v606_v18 = vld [vmem:[%s957_s1 + $0x40] sm:$0xf]  ;;  %v711_v19 = vld [vmem:[%s957_s1 + $0x44] sm:$0xf0]  ;;  %v710_v20 = vld [vmem:[%s957_s1 + $0x44] sm:$0xf] }
  0x10   : > { %v608_v21 = vld [vmem:[%s957_s1 + $0x48] sm:$0xf0]  ;;  %v725_v22 = vld [vmem:[%s959_s3 + $0x38] sm:$0xff]  ;;  %v607_v23 = vor.u32 %v711_v19, %v606_v18  ;;  %v598_v26 = vld [vmem:[%s957_s1 + $0x30] sm:$0xf]  ;;  %s963_s19 = smov (!%p212_p3, %s565_s19), 1 }
  0x11   : > { %v733_v24 = vld [vmem:[%s959_s3 + $0x78] sm:$0xff]  ;;  %v611_v25 = vor.u32 %v710_v20, %v608_v21  ;;  %485 = vmatpush.bf16.msra.mxu2 %v725_v22  ;;  %v724_v28 = vld [vmem:[%s959_s3 + $0x30] sm:$0xff]  ;;  %v590_v34 = vld [vmem:[%s957_s1 + $0x20] sm:$0xf]  ;;  %s570_s8 = sshll.u32 %s963_s19, 2  ;;  %s571_s7 = sshll.u32 %s963_s19, 3 }
  0x12   : > { %324 = vmatpush.bf16.msra.mxu0 %v623_v10  ;;  %v709_v27 = vld [vmem:[%s957_s1 + $0x34] sm:$0xf0]  ;;  %v708_v29 = vld [vmem:[%s957_s1 + $0x34] sm:$0xf]  ;;  %v600_v30 = vld [vmem:[%s957_s1 + $0x38] sm:$0xf0]  ;;  %498 = vmatpush.bf16.msra.mxu3 %v733_v24  ;;  %s215_s13 = scalar_lea.vmem %s956_s0, %s570_s8  ;;  %s219_s10 = scalar_lea.vmem %s961_s5, %s571_s7 }
  0x13   : > { %337 = vmatpush.bf16.msra.mxu1 %v627_v11  ;;  %v732_v31 = vld [vmem:[%s959_s3 + $0x70] sm:$0xff]  ;;  %v599_v32 = vor.u32 %v709_v27, %v598_v26  ;;  %v603_v33 = vor.u32 %v708_v29, %v600_v30  ;;  %v707_v35 = vld [vmem:[%s957_s1 + $0x24] sm:$0xf0]  ;;  %v706_v37 = vld [vmem:[%s957_s1 + $0x24] sm:$0xf] }
  0x14   : > { %v723_v36 = vld [vmem:[%s959_s3 + $0x28] sm:$0xff]  ;;  %v591_v40 = vor.u32 %v707_v35, %v590_v34  ;;  %v582_v42 = vld [vmem:[%s957_s1 + $0x10] sm:$0xf]  ;;  %v705_v43 = vld [vmem:[%s957_s1 + $0x14] sm:$0xf0] }
  0x15   : > { %486 = vmatpush.bf16.msra.mxu2 %v724_v28  ;;  %v592_v38 = vld [vmem:[%s957_s1 + $0x28] sm:$0xf0]  ;;  %v722_v44 = vld [vmem:[%s959_s3 + $0x20] sm:$0xff]  ;;  %v704_v45 = vld [vmem:[%s957_s1 + $0x14] sm:$0xf]  ;;  %v583_v48 = vor.u32 %v705_v43, %v582_v42 }
  0x16   : > { %325 = vmatpush.bf16.msra.mxu0 %v615_v16  ;;  %499 = vmatpush.bf16.msra.mxu3 %v732_v31  ;;  %v731_v39 = vld [vmem:[%s959_s3 + $0x68] sm:$0xff]  ;;  %v595_v41 = vor.u32 %v706_v37, %v592_v38  ;;  %v584_v46 = vld [vmem:[%s957_s1 + $0x18] sm:$0xf0]  ;;  %v730_v47 = vld [vmem:[%s959_s3 + $0x60] sm:$0xff] }
  0x17   : > { %338 = vmatpush.bf16.msra.mxu1 %v619_v17  ;;  %v587_v49 = vor.u32 %v704_v45, %v584_v46  ;;  %v574_v50 = vld [vmem:[%s957_s1] sm:$0xf]  ;;  %v703_v51 = vld [vmem:[%s957_s1 + $0x4] sm:$0xf0]  ;;  %v721_v52 = vld [vmem:[%s959_s3 + $0x18] sm:$0xff] }
  0x18   : > { %v702_v53 = vld [vmem:[%s957_s1 + $0x4] sm:$0xf]  ;;  %v576_v54 = vld [vmem:[%s957_s1 + $0x8] sm:$0xf0]  ;;  %v729_v55 = vld [vmem:[%s959_s3 + $0x58] sm:$0xff]  ;;  %v575_v56 = vor.u32 %v703_v51, %v574_v50 }
  0x19   : > { %487 = vmatpush.bf16.msra.mxu2 %v723_v36  ;;  %v579_v57 = vor.u32 %v702_v53, %v576_v54  ;;  %v720_v58 = vld [vmem:[%s959_s3 + $0x10] sm:$0xff]  ;;  %v220_v60 = vld [vmem:[%s215_s13] sm:$0xf]  ;;  %v719_v61 = vld [vmem:[%s959_s3 + $0x8] sm:$0xff] }
  0x1a   : > { %326 = vmatpush.bf16.msra.mxu0 %v607_v23  ;;  %500 = vmatpush.bf16.msra.mxu3 %v731_v39  ;;  %v728_v59 = vld [vmem:[%s959_s3 + $0x50] sm:$0xff]  ;;  %v727_v62 = vld [vmem:[%s959_s3 + $0x48] sm:$0xff]  ;;  %v718_v63 = vld [vmem:[%s959_s3] sm:$0xff] }
  0x1b   : > { %339 = vmatpush.bf16.msra.mxu1 %v611_v25  ;;  %v726_v0 = vld [vmem:[%s959_s3 + $0x40] sm:$0xff] }
  0x1c   : > { %v237_v1 = vld [vmem:[%s958_s2] sm:$0x3] }
  0x1d   : > { %488 = vmatpush.bf16.msra.mxu2 %v722_v44  ;;  %v239_v2 = vperm.slane %v237_v1, 0  ;;  %v240_v3 = vperm.slane %v237_v1, 1  ;;  %v742_v14 = vld [vmem:[%s960_s4] ss:$0 sm:$0xff] }
  0x1e   : > { %327 = vmatpush.bf16.msra.mxu0 %v599_v32  ;;  %501 = vmatpush.bf16.msra.mxu3 %v730_v47 }
  0x1f   : > { %340 = vmatpush.bf16.msra.mxu1 %v603_v33 }
  0x21   : > { %489 = vmatpush.bf16.msra.mxu2 %v721_v52 }
  0x22   : > { %328 = vmatpush.bf16.msra.mxu0 %v591_v40  ;;  %502 = vmatpush.bf16.msra.mxu3 %v729_v55 }
  0x23   : > { %341 = vmatpush.bf16.msra.mxu1 %v595_v41 }
  0x25   : > { %490 = vmatpush.bf16.msra.mxu2 %v720_v58 }
  0x26   : > { %329 = vmatpush.bf16.msra.mxu0 %v583_v48  ;;  %503 = vmatpush.bf16.msra.mxu3 %v728_v59 }
  0x27   : > { %342 = vmatpush.bf16.msra.mxu1 %v587_v49 }
  0x29   : > { %491 = vmatpush.bf16.msra.mxu2 %v719_v61 }
  0x2a   : > { %330 = vmatpush.bf16.msra.mxu0 %v575_v56  ;;  %504 = vmatpush.bf16.msra.mxu3 %v727_v62 }
  0x2b   : > { %343 = vmatpush.bf16.msra.mxu1 %v579_v57 }
  0x2d   : > { %331 = vmatmul.bf16.vlgmr.msra.gmra.mxu0 %v220_v60  ;;  %492 = vmatpush.bf16.msra.mxu2 %v718_v63 }
  0x2e   : > { %344 = vmatmul.bf16.vlgmr.msra.gmra.mxu1 %v220_v60  ;;  %505 = vmatpush.bf16.msra.mxu3 %v726_v0 }
  0xaa   : > { %v332_v4 = vpop.f32.mrf.mxu0 }
  0xab   : > { %v333_v5 = vadd.f32 %v332_v4, %v239_v2  ;;  %v345_v6 = vpop.f32.mrf.mxu1 }
  0xac   : > { %v346_v7 = vadd.f32 %v345_v6, %v240_v3 }
  0xad   : > { %v349_v8 = vmax.f32 %v333_v5, 0.0 }
  0xae   : > { %v350_v9 = vmax.f32 %v346_v7, 0.0 }
  0xaf   : > { %v351_v10 = vpack.c.bf16 %v349_v8, %v349_v8 }
  0xb0   : > { %v352_v11 = vpack.c.bf16 %v350_v9, %v350_v9 }
  0xb1   : > { %493 = vmatmul.bf16.vlgmr.msra.gmra.mxu2 %v351_v10 }
  0xb2   : > { %506 = vmatmul.bf16.vlgmr.msra.gmra.mxu3 %v352_v11  ;;  %v334_v12 = vpop.f32.mrf.mxu0 }
  0xb3   : > { %v347_v13 = vpop.f32.mrf.mxu1 }
 0x134   : > { %v494_v15 = vpop.f32.mrf.mxu2 }
 0x135   : > { %v495_v16 = vadd.f32 %v742_v14, %v494_v15  ;;  %v507_v17 = vpop.f32.mrf.mxu3 }
 0x137   : > { %v508_v18 = vadd.f32 %v507_v17, %v495_v16 }
 0x139   : > { %511 = vst [vmem:[%s219_s10] sm:$0xff] %v508_v18 }
 0x13c   : > { %v496_v19 = vpop.f32.mrf.mxu2 }
 0x13d   : > { %v509_v20 = vpop.f32.mrf.mxu3 }
 0x13e PF: > { %s15_s18 = sadd.s32 1, %s749_s18  }
 0x13f   : > { %p12_p4 = scmp.ge.s32.totalorder %s15_s18, 4  }
 0x141   :  { %14 = sbr.rel (!%p12_p4) target bundleno = 1 (0x1), region = 70 }

</bundles_post_ra>
